<compile_context>
chip_gen: v7x
topology: tpu7x:2x2x1
jax: 0.10.0
libtpu: 0.0.40
codegen_flags: <defaults>
</compile_context>

<pallas_src>
import jax
import jax.numpy as jnp
from jax import lax
from jax.experimental import pallas as pl
from jax.experimental.pallas import tpu as pltpu

# RReLU default bounds in PyTorch: lower=1/8, upper=1/3.
# TODO(synk): training-mode RReLU samples a random slope per element; we use the
# deterministic eval-mode slope (lower+upper)/2 (its expected value).
_RRELU_SLOPE = (1.0 / 8.0 + 1.0 / 3.0) / 2.0
_NORM_EPS = 1e-12           # F.normalize eps
_LANE = 128                 # TPU lane width
_SUBLANE = 8                # TPU sublane width
_MAX_TILE_B = 256           # batch tile (multiple of 256 for v7x MXU / 2 TCs)


def _round_up(n, m):
    return ((n + m - 1) // m) * m


def _normalize(z):
    # F.normalize(z, dim=1) == z / max(||z||, eps) == z * rsqrt(max(||z||^2, eps^2))
    sq = jnp.sum(z * z, axis=1, keepdims=True)
    return z * lax.rsqrt(jnp.maximum(sq, _NORM_EPS * _NORM_EPS))


def _rrelu(z):
    return jnp.where(z >= 0, z, z * _RRELU_SLOPE)


# ---------------- semantic branch (x-independent, precomputable) -------------
def semantic_kernel(s_ref, sw_ref, sb_ref, s1w_ref, s1b_ref, outs_ref):
    s = s_ref[...].astype(jnp.float32)
    out_s = jnp.dot(s, sw_ref[...], preferred_element_type=jnp.float32) + sb_ref[...]
    out_s = _rrelu(_normalize(out_s))
    out_s = jnp.dot(out_s, s1w_ref[...], preferred_element_type=jnp.float32) + s1b_ref[...]
    out_s = _rrelu(_normalize(out_s))
    outs_ref[...] = out_s


def precompute_semantic(s, params, c_pad=None):
    """Returns out_s padded to (c_pad, SEM_DIM); rows >= C are don't-care."""
    C, sem_dim = s.shape
    if c_pad is None:
        c_pad = _round_up(max(C, _LANE), _LANE)
    s_pad = jnp.zeros((c_pad, sem_dim), jnp.float32).at[:C, :].set(
        s.astype(jnp.float32))

    vmem = pl.BlockSpec(memory_space=pltpu.MemorySpace.VMEM)
    flops = 2 * c_pad * sem_dim * sem_dim * 2
    bytes_accessed = 4 * (2 * c_pad * sem_dim + 2 * sem_dim * sem_dim + 2 * sem_dim)
    return pl.pallas_call(
        semantic_kernel,
        out_shape=jax.ShapeDtypeStruct((c_pad, sem_dim), jnp.float32),
        in_specs=[vmem] * 5,
        out_specs=vmem,
        cost_estimate=pl.CostEstimate(
            flops=flops, transcendentals=2 * c_pad, bytes_accessed=bytes_accessed),
    )(s_pad, params["sw"], params["sb"], params["s1w"], params["s1b"])


# ---------------- visual branch + similarity ---------------------------------
def visual_kernel(x_ref, vw_ref, vb_ref, v1w_ref, v1b_ref, outs_ref, out_ref):
    x = x_ref[...].astype(jnp.float32)
    out_v = jnp.dot(x, vw_ref[...], preferred_element_type=jnp.float32) + vb_ref[...]
    out_v = _rrelu(_normalize(out_v))
    out_v = jnp.dot(out_v, v1w_ref[...], preferred_element_type=jnp.float32) + v1b_ref[...]
    out_v = _rrelu(_normalize(out_v))
    # out_v @ out_s.T without materializing a transpose: contract last dims.
    out_ref[...] = lax.dot_general(
        out_v, outs_ref[...],
        dimension_numbers=(((1,), (1,)), ((), ())),
        preferred_element_type=jnp.float32)


def devise_forward(x, s, params, out_s_pad=None):
    """Forward pass matching Network.forward: returns (B, C) similarity scores.

    `out_s_pad` (from precompute_semantic) can be passed to reuse the class
    embeddings across many calls.
    """
    B, vis_dim = x.shape
    C, sem_dim = s.shape
    c_pad = _round_up(max(C, _LANE), _LANE)

    if out_s_pad is None:
        out_s_pad = precompute_semantic(s, params, c_pad)

    # Batch tiling: one tile if small, else 256-row tiles on a parallel grid.
    if B <= _MAX_TILE_B:
        b_pad = _round_up(B, _SUBLANE)
        tile_b = b_pad
    else:
        b_pad = _round_up(B, _MAX_TILE_B)
        tile_b = _MAX_TILE_B
    x_pad = x if b_pad == B else jnp.zeros((b_pad, vis_dim), x.dtype).at[:B, :].set(x)

    grid = (b_pad // tile_b,)
    full2d = lambda i: (0, 0)
    in_specs = [
        pl.BlockSpec((tile_b, vis_dim), lambda i: (i, 0)),   # x tile
        pl.BlockSpec((vis_dim, sem_dim), full2d),            # vw
        pl.BlockSpec((1, sem_dim), full2d),                  # vb
        pl.BlockSpec((sem_dim, sem_dim), full2d),            # v1w
        pl.BlockSpec((1, sem_dim), full2d),                  # v1b
        pl.BlockSpec((c_pad, sem_dim), full2d),              # out_s (precomputed)
    ]
    out_spec = pl.BlockSpec((tile_b, c_pad), lambda i: (i, 0))

    flops = 2 * b_pad * sem_dim * (vis_dim + sem_dim + c_pad)
    bytes_accessed = 4 * (b_pad * vis_dim + vis_dim * sem_dim + sem_dim * sem_dim
                          + 2 * sem_dim + c_pad * sem_dim + b_pad * c_pad)

    out_pad = pl.pallas_call(
        visual_kernel,
        out_shape=jax.ShapeDtypeStruct((b_pad, c_pad), jnp.float32),
        grid=grid,
        in_specs=in_specs,
        out_specs=out_spec,
        compiler_params=pltpu.CompilerParams(dimension_semantics=("parallel",)),
        cost_estimate=pl.CostEstimate(
            flops=flops, transcendentals=2 * b_pad, bytes_accessed=bytes_accessed),
    )(x_pad, params["vw"], params["vb"], params["v1w"], params["v1b"], out_s_pad)

    return out_pad[:B, :C]


# ---------------- parameter init (matches PyTorch module) ---------------------
def _xavier_uniform(key, shape):
    # shape = (out_dim, in_dim) like nn.Linear.weight; xavier bound uses both fans.
    fan_out, fan_in = shape
    bound = (6.0 / (fan_in + fan_out)) ** 0.5
    return jax.random.uniform(key, shape, jnp.float32, -bound, bound)


def _linear_bias(key, in_dim, out_dim):
    # PyTorch nn.Linear default bias init: U(-1/sqrt(fan_in), 1/sqrt(fan_in)).
    bound = 1.0 / (in_dim ** 0.5)
    return jax.random.uniform(key, (1, out_dim), jnp.float32, -bound, bound)


def make_params(key, vis_dim, sem_dim):
    keys = jax.random.split(key, 8)
    # nn.Linear stores W as (out, in); transpose to (in, out) for the kernels.
    return {
        "vw": _xavier_uniform(keys[0], (sem_dim, vis_dim)).T,
        "vb": _linear_bias(keys[1], vis_dim, sem_dim),
        "v1w": _xavier_uniform(keys[2], (sem_dim, sem_dim)).T,
        "v1b": _linear_bias(keys[3], sem_dim, sem_dim),
        "sw": _xavier_uniform(keys[4], (sem_dim, sem_dim)).T,
        "sb": _linear_bias(keys[5], sem_dim, sem_dim),
        "s1w": _xavier_uniform(keys[6], (sem_dim, sem_dim)).T,
        "s1b": _linear_bias(keys[7], sem_dim, sem_dim),
    }


def _ref_forward(x, s, params):
    # Pure-JAX reference of the PyTorch forward (eval-mode RReLU).
    def norm(z):
        n = jnp.sqrt(jnp.sum(z * z, axis=1, keepdims=True))
        return z / jnp.maximum(n, _NORM_EPS)

    def rrelu(z):
        return jnp.where(z >= 0, z, z * _RRELU_SLOPE)

    ov = rrelu(norm(x @ params["vw"] + params["vb"]))
    ov = rrelu(norm(ov @ params["v1w"] + params["v1b"]))
    os_ = rrelu(norm(s @ params["sw"] + params["sb"]))
    os_ = rrelu(norm(os_ @ params["s1w"] + params["s1b"]))
    return ov @ os_.T


if __name__ == "__main__":
    key = jax.random.PRNGKey(0)
    k_x, k_s, k_p = jax.random.split(key, 3)

    B, C = 8, 6          # batch of visual features, number of classes
    VIS_DIM, SEM_DIM = 32, 16

    x = jax.random.normal(k_x, (B, VIS_DIM), jnp.float32)
    s = jax.random.normal(k_s, (C, SEM_DIM), jnp.float32)
    params = make_params(k_p, VIS_DIM, SEM_DIM)

    out = devise_forward(x, s, params)
    jax.block_until_ready(out)
    assert out.shape == (B, C) and out.dtype == jnp.float32

    # Reuse of the cached semantic branch (class embeddings computed once).
    out_s_pad = precompute_semantic(s, params)
    out2 = devise_forward(x, s, params, out_s_pad=out_s_pad)
    jax.block_until_ready(out2)

    ref = _ref_forward(x, s, params)
    assert jnp.allclose(out, ref, rtol=2e-4, atol=2e-4)
    assert jnp.allclose(out2, ref, rtol=2e-4, atol=2e-4)
    print("KERNEL_OK")
</pallas_src>

<mosaic_0001>
module attributes {stable_mosaic.version = 11 : i64} {
  func.func @semantic_kernel(%arg0: memref<128x16xf32, #tpu.memory_space<vmem>>, %arg1: memref<16x16xf32, #tpu.memory_space<vmem>>, %arg2: memref<1x16xf32, #tpu.memory_space<vmem>>, %arg3: memref<16x16xf32, #tpu.memory_space<vmem>>, %arg4: memref<1x16xf32, #tpu.memory_space<vmem>>, %arg5: memref<128x16xf32, #tpu.memory_space<vmem>>) attributes {dimension_semantics = [], scalar_prefetch = 0 : i64, scratch_operands = 0 : i64, tpu.core_type = #tpu.core_type<tc>} {
    %c0 = arith.constant 0 : index
    %c0_0 = arith.constant 0 : index
    %0 = vector.load %arg0[%c0, %c0_0] : memref<128x16xf32, #tpu.memory_space<vmem>>, vector<128x16xf32>
    %c0_1 = arith.constant 0 : index
    %c0_2 = arith.constant 0 : index
    %1 = vector.load %arg1[%c0_1, %c0_2] : memref<16x16xf32, #tpu.memory_space<vmem>>, vector<16x16xf32>
    %cst = arith.constant dense<0.000000e+00> : vector<128x16xf32>
    %2 = tpu.matmul %0, %1, %cst {dimension_numbers = #tpu.dot_dimension_numbers<[1], [0], [0], [1], [0, 0, 1, 1], [], []>} : vector<128x16xf32>, vector<16x16xf32>, vector<128x16xf32> -> vector<128x16xf32>
    %c0_3 = arith.constant 0 : index
    %c0_4 = arith.constant 0 : index
    %3 = vector.load %arg2[%c0_3, %c0_4] : memref<1x16xf32, #tpu.memory_space<vmem>>, vector<1x16xf32>
    %4 = vector.broadcast %3 : vector<1x16xf32> to vector<128x16xf32>
    %5 = arith.addf %2, %4 : vector<128x16xf32>
    %6 = arith.mulf %5, %5 : vector<128x16xf32>
    %cst_5 = arith.constant dense<0.000000e+00> : vector<128xf32>
    %7 = vector.multi_reduction <add>, %6, %cst_5 [1] : vector<128x16xf32> to vector<128xf32>
    %8 = vector.shape_cast %7 : vector<128xf32> to vector<128x1xf32>
    %cst_6 = arith.constant 1.000000e-24 : f32
    %9 = vector.broadcast %cst_6 : f32 to vector<128x1xf32>
    %10 = arith.maximumf %8, %9 : vector<128x1xf32>
    %11 = math.rsqrt %10 : vector<128x1xf32>
    %12 = vector.broadcast %11 : vector<128x1xf32> to vector<128x16xf32>
    %13 = arith.mulf %5, %12 : vector<128x16xf32>
    %cst_7 = arith.constant 0.000000e+00 : f32
    %14 = vector.broadcast %cst_7 : f32 to vector<128x16xf32>
    %15 = arith.cmpf oge, %13, %14 : vector<128x16xf32>
    %cst_8 = arith.constant 0.229166672 : f32
    %16 = vector.broadcast %cst_8 : f32 to vector<128x16xf32>
    %17 = arith.mulf %13, %16 : vector<128x16xf32>
    %18 = arith.select %15, %13, %17 : vector<128x16xi1>, vector<128x16xf32>
    %c0_9 = arith.constant 0 : index
    %c0_10 = arith.constant 0 : index
    %19 = vector.load %arg3[%c0_9, %c0_10] : memref<16x16xf32, #tpu.memory_space<vmem>>, vector<16x16xf32>
    %cst_11 = arith.constant dense<0.000000e+00> : vector<128x16xf32>
    %20 = tpu.matmul %18, %19, %cst_11 {dimension_numbers = #tpu.dot_dimension_numbers<[1], [0], [0], [1], [0, 0, 1, 1], [], []>} : vector<128x16xf32>, vector<16x16xf32>, vector<128x16xf32> -> vector<128x16xf32>
    %c0_12 = arith.constant 0 : index
    %c0_13 = arith.constant 0 : index
    %21 = vector.load %arg4[%c0_12, %c0_13] : memref<1x16xf32, #tpu.memory_space<vmem>>, vector<1x16xf32>
    %22 = vector.broadcast %21 : vector<1x16xf32> to vector<128x16xf32>
    %23 = arith.addf %20, %22 : vector<128x16xf32>
    %24 = arith.mulf %23, %23 : vector<128x16xf32>
    %cst_14 = arith.constant dense<0.000000e+00> : vector<128xf32>
    %25 = vector.multi_reduction <add>, %24, %cst_14 [1] : vector<128x16xf32> to vector<128xf32>
    %26 = vector.shape_cast %25 : vector<128xf32> to vector<128x1xf32>
    %cst_15 = arith.constant 1.000000e-24 : f32
    %27 = vector.broadcast %cst_15 : f32 to vector<128x1xf32>
    %28 = arith.maximumf %26, %27 : vector<128x1xf32>
    %29 = math.rsqrt %28 : vector<128x1xf32>
    %30 = vector.broadcast %29 : vector<128x1xf32> to vector<128x16xf32>
    %31 = arith.mulf %23, %30 : vector<128x16xf32>
    %cst_16 = arith.constant 0.000000e+00 : f32
    %32 = vector.broadcast %cst_16 : f32 to vector<128x16xf32>
    %33 = arith.cmpf oge, %31, %32 : vector<128x16xf32>
    %cst_17 = arith.constant 0.229166672 : f32
    %34 = vector.broadcast %cst_17 : f32 to vector<128x16xf32>
    %35 = arith.mulf %31, %34 : vector<128x16xf32>
    %36 = arith.select %33, %31, %35 : vector<128x16xi1>, vector<128x16xf32>
    %c0_18 = arith.constant 0 : index
    %c0_19 = arith.constant 0 : index
    %37 = vector.load %arg5[%c0_18, %c0_19] : memref<128x16xf32, #tpu.memory_space<vmem>>, vector<128x16xf32>
    tpu.vector_store %arg5[%c0_18, %c0_19], %36 {strides = array<i32>} : memref<128x16xf32, #tpu.memory_space<vmem>>, vector<128x16xf32>,
    return
  }
}

</mosaic_0001>

<bundles_post_ra>
// kernel: tpu_custom_call.1
= control target key start
LH: loop header
LB: loop body
LE: loop exit
PB: predicated region body
PF: predicated region fallthrough
CT: control target
= control target key end

     0   :  { %vm45_vm0 = vcmask 130048   ;;  %s1399_s1 = inlined_call_operand.vmem [shape: f32[16,16], index: 1, kind: input, shape index: {}]   ;;  %s1400_s0 = inlined_call_operand.vmem [shape: f32[128,16], index: 0, kind: input, shape index: {}]   ;;  %s1401_s2 = inlined_call_operand.vmem [shape: f32[1,16], index: 2, kind: input, shape index: {}]   ;;  %s1402_s3 = inlined_call_operand.vmem [shape: f32[16,16], index: 3, kind: input, shape index: {}]   ;;  %s1403_s4 = inlined_call_operand.vmem [shape: f32[1,16], index: 4, kind: input, shape index: {}]   ;;  %s1404_s5 = inlined_call_operand.vmem [shape: f32[128,16], index: 5, kind: output, shape index: {}]  }
   0x1   :  { %v36_v0 = vld [vmem:[%s1399_s1] sm:$0xff]  ;;  %v37_v1 = vld [vmem:[%s1399_s1 + $0x8] sm:$0xff]  ;;  %v22_v5 = vld [vmem:[%s1400_s0 + $0x10] sm:$0xff] }
   0x2   :  { %v20_v2 = vld [vmem:[%s1400_s0] sm:$0xff]  ;;  %v907_v3 = vpack.c.bf16 %v37_v1, %v36_v0  ;;  %v21_v4 = vld [vmem:[%s1400_s0 + $0x8] sm:$0xff]  ;;  %v23_v6 = vld [vmem:[%s1400_s0 + $0x18] sm:$0xff] }
   0x3   :  { %855 = vmatprep.mubr.msk.f32.mxu0 %vm45_vm0, %v20_v2  ;;  %v24_v7 = vld [vmem:[%s1400_s0 + $0x20] sm:$0xff]  ;;  %v25_v8 = vld [vmem:[%s1400_s0 + $0x28] sm:$0xff]  ;;  %v26_v9 = vld [vmem:[%s1400_s0 + $0x30] sm:$0xff] }
   0x4   :  { %908 = vmatprep.subr.bf16.mxu0 %v907_v3  ;;  %v27_v10 = vld [vmem:[%s1400_s0 + $0x38] sm:$0xff]  ;;  %v28_v11 = vld [vmem:[%s1400_s0 + $0x40] sm:$0xff]  ;;  %v29_v12 = vld [vmem:[%s1400_s0 + $0x48] sm:$0xff] }
   0x5   :  { %910 = vmatpush3.bf16.msra.mxu0 %v907_v3  ;;  %v30_v13 = vld [vmem:[%s1400_s0 + $0x50] sm:$0xff]  ;;  %v31_v14 = vld [vmem:[%s1400_s0 + $0x58] sm:$0xff]  ;;  %v32_v15 = vld [vmem:[%s1400_s0 + $0x60] sm:$0xff] }
   0x6   :  { %v33_v16 = vld [vmem:[%s1400_s0 + $0x68] sm:$0xff]  ;;  %v34_v17 = vld [vmem:[%s1400_s0 + $0x70] sm:$0xff]  ;;  %v35_v18 = vld [vmem:[%s1400_s0 + $0x78] sm:$0xff] }
   0x7   :  { %v1082_v19 = vld [vmem:[%s1401_s2] ss:$0 sm:$0xff] }
   0x8   :  { %856 = vmatmul.mubr.msk.f32.vlgmr.msra.gmra.mrb[0].mxu0 %vm45_vm0, %v21_v4 }
   0x9   :  { %858 = vmatprep.mubr.msk.f32.mxu0 %vm45_vm0, %v22_v5 }
   0xc   :  { %859 = vmatmul.mubr.msk.f32.gmra.mrb[2].mxu0 %vm45_vm0, %v23_v6 }
   0xd   :  { %861 = vmatprep.mubr.msk.f32.mxu0 %vm45_vm0, %v24_v7 }
  0x10   :  { %862 = vmatmul.mubr.msk.f32.gmra.mrb[4].mxu0 %vm45_vm0, %v25_v8 }
  0x11   :  { %864 = vmatprep.mubr.msk.f32.mxu0 %vm45_vm0, %v26_v9 }
  0x14   :  { %865 = vmatmul.mubr.msk.f32.gmra.mrb[6].mxu0 %vm45_vm0, %v27_v10 }
  0x15   :  { %867 = vmatprep.mubr.msk.f32.mxu0 %vm45_vm0, %v28_v11 }
  0x18   :  { %868 = vmatmul.mubr.msk.f32.gmra.mrb[8].mxu0 %vm45_vm0, %v29_v12 }
  0x19   :  { %870 = vmatprep.mubr.msk.f32.mxu0 %vm45_vm0, %v30_v13 }
  0x1c   :  { %871 = vmatmul.mubr.msk.f32.gmra.mrb[10].mxu0 %vm45_vm0, %v31_v14 }
  0x1d   :  { %873 = vmatprep.mubr.msk.f32.mxu0 %vm45_vm0, %v32_v15 }
  0x20   :  { %874 = vmatmul.mubr.msk.f32.gmra.mrb[12].mxu0 %vm45_vm0, %v33_v16 }
  0x21   :  { %876 = vmatprep.mubr.msk.f32.mxu0 %vm45_vm0, %v34_v17 }
  0x24   :  { %877 = vmatmul.mubr.msk.f32.gmra.mrb[14].mxu0 %vm45_vm0, %v35_v18 }
  0xdb   :  { %v857_v20 = vpop.f32.mrb[0].mxu0 }
  0xdc   :  { %v160_v21 = vpop.f32.mrb[1].mxu0  ;;  %v1085_v22 = vadd.f32 %v857_v20, %v1082_v19  ;;  %v400_v20 = vld [vmem:[%s1402_s3 + $0x8] sm:$0xff] }
  0xdd   :  { %v1088_v23 = vadd.f32 %v1082_v19, %v160_v21 }
  0xde   :  { %v240_v30 = vmul.f32 %v1085_v22, %v1085_v22 }
  0xdf   :  { %v860_v24 = vpop.f32.mrb[2].mxu0  ;;  %v239_v25 = vmul.f32 %v1088_v23, %v1088_v23 }
  0xe0   :  { %v170_v26 = vpop.f32.mrb[3].mxu0  ;;  %v1093_v27 = vadd.f32 %v860_v24, %v1082_v19  ;;  %v258_v37 = vsel %vm45_vm0, %v240_v30, 0.0 }
  0xe1   :  { %v1096_v28 = vadd.f32 %v1082_v19, %v170_v26  ;;  %v255_v29 = vsel %vm45_vm0, %v239_v25, 0.0 }
  0xe2   :  { %256 = vadd.xlane.f32.xlu0 %v255_v29  ;;  %v242_v38 = vmul.f32 %v1093_v27, %v1093_v27 }
  0xe3   :  { %v863_v31 = vpop.f32.mrb[4].mxu0  ;;  %v241_v32 = vmul.f32 %v1096_v28, %v1096_v28 }
  0xe4   :  { %v1104_v33 = vadd.f32 %v863_v31, %v1082_v19  ;;  %v180_v34 = vpop.f32.mrb[5].mxu0  ;;  %v264_v45 = vsel %vm45_vm0, %v242_v38, 0.0 }
  0xe5   :  { %v1107_v35 = vadd.f32 %v1082_v19, %v180_v34  ;;  %v261_v36 = vsel %vm45_vm0, %v241_v32, 0.0 }
  0xe6   :  { %262 = vadd.xlane.f32.xlu1 %v261_v36  ;;  %259 = vadd.xlane.f32.xlu0 %v258_v37  ;;  %v244_v42 = vmul.f32 %v1104_v33, %v1104_v33 }
  0xe7   :  { %v866_v39 = vpop.f32.mrb[6].mxu0  ;;  %v243_v40 = vmul.f32 %v1107_v35, %v1107_v35 }
  0xe8   :  { %v190_v41 = vpop.f32.mrb[7].mxu0  ;;  %v1118_v43 = vadd.f32 %v866_v39, %v1082_v19  ;;  %v270_v50 = vsel %vm45_vm0, %v244_v42, 0.0 }
  0xe9   :  { %v1121_v44 = vadd.f32 %v1082_v19, %v190_v41  ;;  %v267_v46 = vsel %vm45_vm0, %v243_v40, 0.0 }
  0xea   :  { %265 = vadd.xlane.f32.xlu1 %v264_v45  ;;  %268 = vadd.xlane.f32.xlu0 %v267_v46  ;;  %v246_v54 = vmul.f32 %v1118_v43, %v1118_v43 }
  0xeb   :  { %v869_v47 = vpop.f32.mrb[8].mxu0  ;;  %v245_v48 = vmul.f32 %v1121_v44, %v1121_v44 }
  0xec   :  { %v200_v49 = vpop.f32.mrb[9].mxu0  ;;  %v1129_v51 = vadd.f32 %v869_v47, %v1082_v19  ;;  %v276_v60 = vsel %vm45_vm0, %v246_v54, 0.0 }
  0xed   :  { %v1132_v52 = vadd.f32 %v1082_v19, %v200_v49  ;;  %v273_v53 = vsel %vm45_vm0, %v245_v48, 0.0 }
  0xee   :  { %271 = vadd.xlane.f32.xlu1 %v270_v50  ;;  %274 = vadd.xlane.f32.xlu0 %v273_v53  ;;  %v248_v62 = vmul.f32 %v1129_v51, %v1129_v51 }
  0xef   :  { %v872_v55 = vpop.f32.mrb[10].mxu0  ;;  %v247_v56 = vmul.f32 %v1132_v52, %v1132_v52 }
  0xf0   :  { %v1140_v57 = vadd.f32 %v872_v55, %v1082_v19  ;;  %v210_v58 = vpop.f32.mrb[11].mxu0  ;;  %v282_v5 = vsel %vm45_vm0, %v248_v62, 0.0 }
  0xf1   :  { %v1143_v59 = vadd.f32 %v1082_v19, %v210_v58  ;;  %v279_v61 = vsel %vm45_vm0, %v247_v56, 0.0 }
  0xf2   :  { %277 = vadd.xlane.f32.xlu1 %v276_v60  ;;  %280 = vadd.xlane.f32.xlu0 %v279_v61  ;;  %v250_v2 = vmul.f32 %v1140_v57, %v1140_v57 }
  0xf3   :  { %v875_v63 = vpop.f32.mrb[12].mxu0  ;;  %v249_v0 = vmul.f32 %v1143_v59, %v1143_v59 }
  0xf4   :  { %v220_v1 = vpop.f32.mrb[13].mxu0  ;;  %v1154_v3 = vadd.f32 %v875_v63, %v1082_v19  ;;  %v288_v10 = vsel %vm45_vm0, %v250_v2, 0.0 }
  0xf5   :  { %v1157_v4 = vadd.f32 %v1082_v19, %v220_v1  ;;  %v285_v6 = vsel %vm45_vm0, %v249_v0, 0.0 }
  0xf6   :  { %283 = vadd.xlane.f32.xlu1 %v282_v5  ;;  %286 = vadd.xlane.f32.xlu0 %v285_v6  ;;  %v252_v14 = vmul.f32 %v1154_v3, %v1154_v3 }
  0xf7   :  { %v878_v7 = vpop.f32.mrb[14].mxu0  ;;  %v251_v8 = vmul.f32 %v1157_v4, %v1157_v4 }
  0xf8   :  { %v230_v9 = vpop.f32.mrb[15].mxu0  ;;  %v1165_v11 = vadd.f32 %v878_v7, %v1082_v19  ;;  %v294_v16 = vsel %vm45_vm0, %v252_v14, 0.0 }
  0xf9   :  { %v1168_v12 = vadd.f32 %v1082_v19, %v230_v9  ;;  %v291_v13 = vsel %vm45_vm0, %v251_v8, 0.0  ;;  %v399_v19 = vld [vmem:[%s1402_s3] sm:$0xff] }
  0xfa   :  { %289 = vadd.xlane.f32.xlu1 %v288_v10  ;;  %292 = vadd.xlane.f32.xlu0 %v291_v13  ;;  %v254_v18 = vmul.f32 %v1165_v11, %v1165_v11  ;;  %v911_v24 = vpack.c.bf16 %v400_v20, %v399_v19 }
  0xfb   :  { %v253_v15 = vmul.f32 %v1168_v12, %v1168_v12 }
  0xfc   :  { %v300_v21 = vsel %vm45_vm0, %v254_v18, 0.0  ;;  %912 = vmatprep.subr.bf16.mxu1 %v911_v24 }
  0xfd   :  { %v297_v17 = vsel %vm45_vm0, %v253_v15, 0.0  ;;  %914 = vmatpush3.bf16.msra.mxu1 %v911_v24 }
  0xfe   :  { %295 = vadd.xlane.f32.xlu1 %v294_v16  ;;  %298 = vadd.xlane.f32.xlu0 %v297_v17 }
 0x102   :  { %301 = vadd.xlane.f32.xlu1 %v300_v21 }
 0x16f   :  { %v257_v25 = vpop.xlane.xlu0 %256 }
 0x170   :  { %v303_v26 = vmax.f32 %v257_v25, 1e-24 }
 0x172   :  { %915 = vrsqrt.f32 %v303_v26 }
 0x173   :  { %v263_v29 = vpop.xlane.xlu1 %262  ;;  %v260_v30 = vpop.xlane.xlu0 %259 }
 0x174   :  { %v305_v31 = vmax.f32 %v263_v29, 1e-24  ;;  %v304_v32 = vmax.f32 %v260_v30, 1e-24 }
 0x176   :  { %917 = vrsqrt.f32 %v305_v31 }
 0x177   :  { %919 = vrsqrt.f32 %v304_v32  ;;  %v266_v34 = vpop.xlane.xlu1 %265  ;;  %v269_v36 = vpop.xlane.xlu0 %268 }
 0x178   :  { %v306_v37 = vmax.f32 %v266_v34, 1e-24  ;;  %v307_v38 = vmax.f32 %v269_v36, 1e-24 }
 0x17a   :  { %921 = vrsqrt.f32 %v306_v37 }
 0x17b   :  { %923 = vrsqrt.f32 %v307_v38  ;;  %v272_v39 = vpop.xlane.xlu1 %271  ;;  %v275_v40 = vpop.xlane.xlu0 %274 }
 0x17c   :  { %v916_v41 = vpop.eup %915  ;;  %v308_v42 = vmax.f32 %v272_v39, 1e-24  ;;  %v309_v45 = vmax.f32 %v275_v40, 1e-24 }
 0x17d   :  { %v335_v46 = vmul.f32 %v916_v41, %v1088_v23 }
 0x17e   :  { %925 = vrsqrt.f32 %v308_v42 }
 0x17f   :  { %927 = vrsqrt.f32 %v309_v45  ;;  %v278_v47 = vpop.xlane.xlu1 %277  ;;  %v281_v48 = vpop.xlane.xlu0 %280  ;;  %vm351_vm1 = vcmp.ge.f32.partialorder %v335_v46, 0.0  ;;  %v367_v49 = vmul.f32 0.22916667, %v335_v46 }
 0x180   :  { %v918_v50 = vpop.eup %917  ;;  %v310_v53 = vmax.f32 %v278_v47, 1e-24  ;;  %v311_v54 = vmax.f32 %v281_v48, 1e-24 }
 0x181   :  { %v920_v55 = vpop.eup %919  ;;  %v383_v56 = vsel %vm351_vm1, %v335_v46, %v367_v49  ;;  %v337_v58 = vmul.f32 %v918_v50, %v1096_v28 }
 0x182   :  { %929 = vrsqrt.f32 %v310_v53  ;;  %883 = vmatprep.mubr.msk.f32.mxu1 %vm45_vm0, %v383_v56  ;;  %v336_v60 = vmul.f32 %v920_v55, %v1085_v22 }
 0x183   :  { %931 = vrsqrt.f32 %v311_v54  ;;  %v284_v23 = vpop.xlane.xlu1 %283  ;;  %v287_v61 = vpop.xlane.xlu0 %286  ;;  %vm353_vm2 = vcmp.ge.f32.partialorder %v337_v58, 0.0  ;;  %v369_v62 = vmul.f32 0.22916667, %v337_v58 }
 0x184   :  { %v922_v63 = vpop.eup %921  ;;  %v312_v0 = vmax.f32 %v284_v23, 1e-24  ;;  %v313_v1 = vmax.f32 %v287_v61, 1e-24  ;;  %vm352_vm3 = vcmp.ge.f32.partialorder %v336_v60, 0.0 }
 0x185   :  { %v924_v2 = vpop.eup %923  ;;  %v368_v5 = vmul.f32 0.22916667, %v336_v60  ;;  %v338_v6 = vmul.f32 %v922_v63, %v1093_v27  ;;  %v385_v28 = vsel %vm353_vm2, %v337_v58, %v369_v62 }
 0x186   :  { %933 = vrsqrt.f32 %v312_v0  ;;  %v339_v7 = vmul.f32 %v924_v2, %v1107_v35 }
 0x187   :  { %935 = vrsqrt.f32 %v313_v1  ;;  %v384_v8 = vsel %vm352_vm3, %v336_v60, %v368_v5  ;;  %v290_v22 = vpop.xlane.xlu1 %289  ;;  %v293_v9 = vpop.xlane.xlu0 %292  ;;  %vm354_vm4 = vcmp.ge.f32.partialorder %v338_v6, 0.0  ;;  %v370_v10 = vmul.f32 0.22916667, %v338_v6 }
 0x188   :  { %v926_v13 = vpop.eup %925  ;;  %884 = vmatmul.mubr.msk.f32.vlgmr.msra.gmra.mrb[0].mxu1 %vm45_vm0, %v384_v8  ;;  %v314_v14 = vmax.f32 %v290_v22, 1e-24  ;;  %v315_v15 = vmax.f32 %v293_v9, 1e-24  ;;  %vm355_vm5 = vcmp.ge.f32.partialorder %v339_v7, 0.0 }
 0x189   :  { %v928_v16 = vpop.eup %927  ;;  %886 = vmatprep.mubr.msk.f32.mxu1 %vm45_vm0, %v385_v28  ;;  %v386_v27 = vsel %vm354_vm4, %v338_v6, %v370_v10  ;;  %v371_v17 = vmul.f32 0.22916667, %v339_v7  ;;  %v340_v18 = vmul.f32 %v926_v13, %v1104_v33 }
 0x18a   :  { %937 = vrsqrt.f32 %v314_v14  ;;  %v341_v35 = vmul.f32 %v928_v16, %v1121_v44 }
 0x18b   :  { %939 = vrsqrt.f32 %v315_v15  ;;  %v296_v19 = vpop.xlane.xlu1 %295  ;;  %v387_v20 = vsel %vm355_vm5, %v339_v7, %v371_v17  ;;  %v299_v21 = vpop.xlane.xlu0 %298  ;;  %vm356_vm6 = vcmp.ge.f32.partialorder %v340_v18, 0.0  ;;  %v372_v24 = vmul.f32 0.22916667, %v340_v18 }
 0x18c   :  { %v930_v25 = vpop.eup %929  ;;  %887 = vmatmul.mubr.msk.f32.gmra.mrb[2].mxu1 %vm45_vm0, %v386_v27  ;;  %v316_v26 = vmax.f32 %v296_v19, 1e-24  ;;  %v317_v29 = vmax.f32 %v299_v21, 1e-24  ;;  %vm357_vm7 = vcmp.ge.f32.partialorder %v341_v35, 0.0 }
 0x18d   :  { %v932_v30 = vpop.eup %931  ;;  %889 = vmatprep.mubr.msk.f32.mxu1 %vm45_vm0, %v387_v20  ;;  %v388_v31 = vsel %vm356_vm6, %v340_v18, %v372_v24  ;;  %v373_v33 = vmul.f32 0.22916667, %v341_v35  ;;  %v342_v32 = vmul.f32 %v930_v25, %v1118_v43 }
 0x18e   :  { %941 = vrsqrt.f32 %v316_v26  ;;  %v343_v44 = vmul.f32 %v932_v30, %v1132_v52 }
 0x18f   :  { %943 = vrsqrt.f32 %v317_v29  ;;  %v302_v34 = vpop.xlane.xlu1 %301  ;;  %v389_v36 = vsel %vm357_vm7, %v341_v35, %v373_v33  ;;  %vm358_vm8 = vcmp.ge.f32.partialorder %v342_v32, 0.0  ;;  %v374_v37 = vmul.f32 0.22916667, %v342_v32 }
 0x190   :  { %v934_v38 = vpop.eup %933  ;;  %890 = vmatmul.mubr.msk.f32.gmra.mrb[4].mxu1 %vm45_vm0, %v388_v31  ;;  %v318_v39 = vmax.f32 %v302_v34, 1e-24  ;;  %vm359_vm9 = vcmp.ge.f32.partialorder %v343_v44, 0.0  ;;  %v375_v40 = vmul.f32 0.22916667, %v343_v44 }
 0x191   :  { %v936_v41 = vpop.eup %935  ;;  %892 = vmatprep.mubr.msk.f32.mxu1 %vm45_vm0, %v389_v36  ;;  %v390_v42 = vsel %vm358_vm8, %v342_v32, %v374_v37  ;;  %v344_v43 = vmul.f32 %v934_v38, %v1129_v51 }
 0x192   :  { %945 = vrsqrt.f32 %v318_v39  ;;  %v391_v45 = vsel %vm359_vm9, %v343_v44, %v375_v40  ;;  %v345_v52 = vmul.f32 %v936_v41, %v1143_v59 }
 0x193   :  { %vm360_vm10 = vcmp.ge.f32.partialorder %v344_v43, 0.0  ;;  %v376_v46 = vmul.f32 0.22916667, %v344_v43 }
 0x194   :  { %v938_v47 = vpop.eup %937  ;;  %893 = vmatmul.mubr.msk.f32.gmra.mrb[6].mxu1 %vm45_vm0, %v390_v42  ;;  %vm361_vm11 = vcmp.ge.f32.partialorder %v345_v52, 0.0  ;;  %v377_v48 = vmul.f32 0.22916667, %v345_v52 }
 0x195   :  { %v940_v49 = vpop.eup %939  ;;  %895 = vmatprep.mubr.msk.f32.mxu1 %vm45_vm0, %v391_v45  ;;  %v392_v50 = vsel %vm360_vm10, %v344_v43, %v376_v46  ;;  %v346_v53 = vmul.f32 %v938_v47, %v1140_v57 }
 0x196   :  { %v393_v54 = vsel %vm361_vm11, %v345_v52, %v377_v48  ;;  %v347_v51 = vmul.f32 %v940_v49, %v1157_v4 }
 0x197   :  { %vm362_vm12 = vcmp.ge.f32.partialorder %v346_v53, 0.0  ;;  %v378_v55 = vmul.f32 0.22916667, %v346_v53 }
 0x198   :  { %v942_v56 = vpop.eup %941  ;;  %896 = vmatmul.mubr.msk.f32.gmra.mrb[8].mxu1 %vm45_vm0, %v392_v50  ;;  %vm363_vm13 = vcmp.ge.f32.partialorder %v347_v51, 0.0  ;;  %v379_v59 = vmul.f32 0.22916667, %v347_v51 }
 0x199   :  { %v944_v58 = vpop.eup %943  ;;  %898 = vmatprep.mubr.msk.f32.mxu1 %vm45_vm0, %v393_v54  ;;  %v394_v60 = vsel %vm362_vm12, %v346_v53, %v378_v55  ;;  %v348_v23 = vmul.f32 %v942_v56, %v1154_v3 }
 0x19a   :  { %v395_v61 = vsel %vm363_vm13, %v347_v51, %v379_v59  ;;  %v349_v62 = vmul.f32 %v944_v58, %v1168_v12  ;;  %v1221_v12 = vld [vmem:[%s1403_s4] ss:$0 sm:$0xff] }
 0x19b   :  { %vm364_vm14 = vcmp.ge.f32.partialorder %v348_v23, 0.0  ;;  %v380_v57 = vmul.f32 0.22916667, %v348_v23 }
 0x19c   :  { %v946_v63 = vpop.eup %945  ;;  %899 = vmatmul.mubr.msk.f32.gmra.mrb[10].mxu1 %vm45_vm0, %v394_v60  ;;  %vm365_vm15 = vcmp.ge.f32.partialorder %v349_v62, 0.0  ;;  %v381_v4 = vmul.f32 0.22916667, %v349_v62 }
 0x19d   :  { %901 = vmatprep.mubr.msk.f32.mxu1 %vm45_vm0, %v395_v61  ;;  %v396_v0 = vsel %vm364_vm14, %v348_v23, %v380_v57  ;;  %v350_v1 = vmul.f32 %v946_v63, %v1165_v11 }
 0x19e   :  { %v397_v2 = vsel %vm365_vm15, %v349_v62, %v381_v4 }
 0x19f   :  { %vm366_vm1 = vcmp.ge.f32.partialorder %v350_v1, 0.0  ;;  %v382_v5 = vmul.f32 0.22916667, %v350_v1 }
 0x1a0   :  { %902 = vmatmul.mubr.msk.f32.gmra.mrb[12].mxu1 %vm45_vm0, %v396_v0 }
 0x1a1   :  { %904 = vmatprep.mubr.msk.f32.mxu1 %vm45_vm0, %v397_v2  ;;  %v398_v3 = vsel %vm366_vm1, %v350_v1, %v382_v5 }
 0x1a4   :  { %905 = vmatmul.mubr.msk.f32.gmra.mrb[14].mxu1 %vm45_vm0, %v398_v3 }
 0x25b   :  { %v885_v6 = vpop.f32.mrb[0].mxu1 }
 0x25c   :  { %v1224_v28 = vadd.f32 %v885_v6, %v1221_v12  ;;  %v522_v11 = vpop.f32.mrb[1].mxu1 }
 0x25d   :  { %v1227_v7 = vadd.f32 %v1221_v12, %v522_v11 }
 0x25e   :  { %v602_v8 = vmul.f32 %v1224_v28, %v1224_v28 }
 0x25f   :  { %v888_v22 = vpop.f32.mrb[2].mxu1  ;;  %v601_v9 = vmul.f32 %v1227_v7, %v1227_v7 }
 0x260   :  { %v1234_v10 = vadd.f32 %v888_v22, %v1221_v12  ;;  %v532_v13 = vpop.f32.mrb[3].mxu1  ;;  %v620_v14 = vsel %vm45_vm0, %v602_v8, 0.0 }
 0x261   :  { %v1238_v15 = vadd.f32 %v1221_v12, %v532_v13  ;;  %621 = vadd.xlane.f32.xlu1 %v620_v14  ;;  %v617_v16 = vsel %vm45_vm0, %v601_v9, 0.0 }
 0x262   :  { %618 = vadd.xlane.f32.xlu0 %v617_v16  ;;  %v604_v27 = vmul.f32 %v1234_v10, %v1234_v10 }
 0x263   :  { %v891_v17 = vpop.f32.mrb[4].mxu1  ;;  %v603_v18 = vmul.f32 %v1238_v15, %v1238_v15 }
 0x264   :  { %v1246_v35 = vadd.f32 %v891_v17, %v1221_v12  ;;  %v542_v19 = vpop.f32.mrb[5].mxu1  ;;  %v626_v20 = vsel %vm45_vm0, %v604_v27, 0.0 }
 0x265   :  { %v1250_v21 = vadd.f32 %v1221_v12, %v542_v19  ;;  %627 = vadd.xlane.f32.xlu1 %v626_v20  ;;  %v623_v24 = vsel %vm45_vm0, %v603_v18, 0.0 }
 0x266   :  { %624 = vadd.xlane.f32.xlu0 %v623_v24  ;;  %v606_v25 = vmul.f32 %v1246_v35, %v1246_v35 }
 0x267   :  { %v894_v26 = vpop.f32.mrb[6].mxu1  ;;  %v605_v29 = vmul.f32 %v1250_v21, %v1250_v21 }
 0x268   :  { %v1258_v30 = vadd.f32 %v894_v26, %v1221_v12  ;;  %v552_v31 = vpop.f32.mrb[7].mxu1  ;;  %v632_v33 = vsel %vm45_vm0, %v606_v25, 0.0 }
 0x269   :  { %v1262_v32 = vadd.f32 %v1221_v12, %v552_v31  ;;  %633 = vadd.xlane.f32.xlu1 %v632_v33  ;;  %v629_v44 = vsel %vm45_vm0, %v605_v29, 0.0 }
 0x26a   :  { %630 = vadd.xlane.f32.xlu0 %v629_v44  ;;  %v608_v34 = vmul.f32 %v1258_v30, %v1258_v30 }
 0x26b   :  { %v897_v36 = vpop.f32.mrb[8].mxu1  ;;  %v607_v37 = vmul.f32 %v1262_v32, %v1262_v32 }
 0x26c   :  { %v1270_v38 = vadd.f32 %v897_v36, %v1221_v12  ;;  %v562_v39 = vpop.f32.mrb[9].mxu1  ;;  %v638_v40 = vsel %vm45_vm0, %v608_v34, 0.0 }
 0x26d   :  { %v1274_v41 = vadd.f32 %v1221_v12, %v562_v39  ;;  %639 = vadd.xlane.f32.xlu1 %v638_v40  ;;  %v635_v42 = vsel %vm45_vm0, %v607_v37, 0.0 }
 0x26e   :  { %636 = vadd.xlane.f32.xlu0 %v635_v42  ;;  %v610_v43 = vmul.f32 %v1270_v38, %v1270_v38 }
 0x26f   :  { %v900_v45 = vpop.f32.mrb[10].mxu1  ;;  %v609_v52 = vmul.f32 %v1274_v41, %v1274_v41 }
 0x270   :  { %v1282_v46 = vadd.f32 %v900_v45, %v1221_v12  ;;  %v572_v47 = vpop.f32.mrb[11].mxu1  ;;  %v644_v48 = vsel %vm45_vm0, %v610_v43, 0.0 }
 0x271   :  { %v1286_v49 = vadd.f32 %v1221_v12, %v572_v47  ;;  %645 = vadd.xlane.f32.xlu1 %v644_v48  ;;  %v641_v50 = vsel %vm45_vm0, %v609_v52, 0.0 }
 0x272   :  { %642 = vadd.xlane.f32.xlu0 %v641_v50  ;;  %v612_v53 = vmul.f32 %v1282_v46, %v1282_v46 }
 0x273   :  { %v903_v54 = vpop.f32.mrb[12].mxu1  ;;  %v611_v51 = vmul.f32 %v1286_v49, %v1286_v49 }
 0x274   :  { %v1294_v55 = vadd.f32 %v903_v54, %v1221_v12  ;;  %v582_v56 = vpop.f32.mrb[13].mxu1  ;;  %v650_v59 = vsel %vm45_vm0, %v612_v53, 0.0 }
 0x275   :  { %v1298_v58 = vadd.f32 %v1221_v12, %v582_v56  ;;  %651 = vadd.xlane.f32.xlu1 %v650_v59  ;;  %v647_v60 = vsel %vm45_vm0, %v611_v51, 0.0 }
 0x276   :  { %648 = vadd.xlane.f32.xlu0 %v647_v60  ;;  %v614_v23 = vmul.f32 %v1294_v55, %v1294_v55 }
 0x277   :  { %v906_v61 = vpop.f32.mrb[14].mxu1  ;;  %v613_v62 = vmul.f32 %v1298_v58, %v1298_v58 }
 0x278   :  { %v1306_v57 = vadd.f32 %v906_v61, %v1221_v12  ;;  %v592_v63 = vpop.f32.mrb[15].mxu1  ;;  %v656_v4 = vsel %vm45_vm0, %v614_v23, 0.0 }
 0x279   :  { %v1310_v0 = vadd.f32 %v1221_v12, %v592_v63  ;;  %657 = vadd.xlane.f32.xlu1 %v656_v4  ;;  %v653_v1 = vsel %vm45_vm0, %v613_v62, 0.0 }
 0x27a   :  { %654 = vadd.xlane.f32.xlu0 %v653_v1  ;;  %v616_v2 = vmul.f32 %v1306_v57, %v1306_v57 }
 0x27b   :  { %v615_v5 = vmul.f32 %v1310_v0, %v1310_v0 }
 0x27c   :  { %v662_v3 = vsel %vm45_vm0, %v616_v2, 0.0 }
 0x27d   :  { %663 = vadd.xlane.f32.xlu1 %v662_v3  ;;  %v659_v6 = vsel %vm45_vm0, %v615_v5, 0.0 }
 0x27e   :  { %660 = vadd.xlane.f32.xlu0 %v659_v6 }
 0x2ee   :  { %v622_v11 = vpop.xlane.xlu1 %621 }
 0x2ef   :  { %v666_v8 = vmax.f32 %v622_v11, 1e-24  ;;  %v619_v12 = vpop.xlane.xlu0 %618 }
 0x2f0   :  { %v665_v22 = vmax.f32 %v619_v12, 1e-24 }
 0x2f1   :  { %947 = vrsqrt.f32 %v666_v8 }
 0x2f2   :  { %949 = vrsqrt.f32 %v665_v22  ;;  %v628_v9 = vpop.xlane.xlu1 %627 }
 0x2f3   :  { %v668_v13 = vmax.f32 %v628_v9, 1e-24  ;;  %v625_v14 = vpop.xlane.xlu0 %624 }
 0x2f4   :  { %v667_v16 = vmax.f32 %v625_v14, 1e-24 }
 0x2f5   :  { %951 = vrsqrt.f32 %v668_v13 }
 0x2f6   :  { %953 = vrsqrt.f32 %v667_v16  ;;  %v634_v27 = vpop.xlane.xlu1 %633 }
 0x2f7   :  { %v670_v17 = vmax.f32 %v634_v27, 1e-24  ;;  %v631_v18 = vpop.xlane.xlu0 %630 }
 0x2f8   :  { %v669_v19 = vmax.f32 %v631_v18, 1e-24 }
 0x2f9   :  { %955 = vrsqrt.f32 %v670_v17 }
 0x2fa   :  { %957 = vrsqrt.f32 %v669_v19  ;;  %v640_v20 = vpop.xlane.xlu1 %639 }
 0x2fb   :  { %v948_v24 = vpop.eup %947  ;;  %v672_v25 = vmax.f32 %v640_v20, 1e-24  ;;  %v637_v26 = vpop.xlane.xlu0 %636 }
 0x2fc   :  { %v950_v29 = vpop.eup %949  ;;  %v698_v31 = vmul.f32 %v948_v24, %v1224_v28  ;;  %v671_v33 = vmax.f32 %v637_v26, 1e-24 }
 0x2fd   :  { %v697_v44 = vmul.f32 %v950_v29, %v1227_v7  ;;  %959 = vrsqrt.f32 %v672_v25 }
 0x2fe   :  { %vm714_vm2 = vcmp.ge.f32.partialorder %v698_v31, 0.0  ;;  %v730_v34 = vmul.f32 0.22916667, %v698_v31  ;;  %961 = vrsqrt.f32 %v671_v33  ;;  %v646_v36 = vpop.xlane.xlu1 %645 }
 0x2ff   :  { %v952_v37 = vpop.eup %951  ;;  %vm713_vm3 = vcmp.ge.f32.partialorder %v697_v44, 0.0  ;;  %v729_v39 = vmul.f32 0.22916667, %v697_v44  ;;  %v674_v40 = vmax.f32 %v646_v36, 1e-24  ;;  %v643_v42 = vpop.xlane.xlu0 %642 }
 0x300   :  { %v954_v43 = vpop.eup %953  ;;  %v746_v45 = vsel %vm714_vm2, %v698_v31, %v730_v34  ;;  %v700_v52 = vmul.f32 %v952_v37, %v1234_v10  ;;  %v673_v47 = vmax.f32 %v643_v42, 1e-24 }
 0x301   :  { %762 = vst.msk [vmem:[%s1404_s5 + $0x8] sm:$0xff] %vm45_vm0, %v746_v45  ;;  %v745_v28 = vsel %vm713_vm3, %v697_v44, %v729_v39  ;;  %v699_v7 = vmul.f32 %v954_v43, %v1238_v15  ;;  %963 = vrsqrt.f32 %v674_v40 }
 0x302   :  { %761 = vst.msk [vmem:[%s1404_s5] sm:$0xff] %vm45_vm0, %v745_v28  ;;  %vm716_vm4 = vcmp.ge.f32.partialorder %v700_v52, 0.0  ;;  %v732_v48 = vmul.f32 0.22916667, %v700_v52  ;;  %965 = vrsqrt.f32 %v673_v47  ;;  %v652_v50 = vpop.xlane.xlu1 %651 }
 0x303   :  { %v956_v10 = vpop.eup %955  ;;  %vm715_vm5 = vcmp.ge.f32.partialorder %v699_v7, 0.0  ;;  %v731_v53 = vmul.f32 0.22916667, %v699_v7  ;;  %v676_v54 = vmax.f32 %v652_v50, 1e-24  ;;  %v649_v51 = vpop.xlane.xlu0 %648 }
 0x304   :  { %v958_v56 = vpop.eup %957  ;;  %v748_v59 = vsel %vm716_vm4, %v700_v52, %v732_v48  ;;  %v702_v60 = vmul.f32 %v956_v10, %v1246_v35  ;;  %v675_v15 = vmax.f32 %v649_v51, 1e-24 }
 0x305   :  { %764 = vst.msk [vmem:[%s1404_s5 + $0x18] sm:$0xff] %vm45_vm0, %v748_v59  ;;  %v747_v23 = vsel %vm715_vm5, %v699_v7, %v731_v53  ;;  %v701_v61 = vmul.f32 %v958_v56, %v1250_v21  ;;  %967 = vrsqrt.f32 %v676_v54 }
 0x306   :  { %763 = vst.msk [vmem:[%s1404_s5 + $0x10] sm:$0xff] %vm45_vm0, %v747_v23  ;;  %vm718_vm6 = vcmp.ge.f32.partialorder %v702_v60, 0.0  ;;  %v734_v62 = vmul.f32 0.22916667, %v702_v60  ;;  %969 = vrsqrt.f32 %v675_v15  ;;  %v658_v63 = vpop.xlane.xlu1 %657 }
 0x307   :  { %v960_v35 = vpop.eup %959  ;;  %vm717_vm7 = vcmp.ge.f32.partialorder %v701_v61, 0.0  ;;  %v733_v4 = vmul.f32 0.22916667, %v701_v61  ;;  %v678_v1 = vmax.f32 %v658_v63, 1e-24  ;;  %v655_v2 = vpop.xlane.xlu0 %654 }
 0x308   :  { %v962_v5 = vpop.eup %961  ;;  %v750_v3 = vsel %vm718_vm6, %v702_v60, %v734_v62  ;;  %v704_v6 = vmul.f32 %v960_v35, %v1258_v30  ;;  %v677_v21 = vmax.f32 %v655_v2, 1e-24 }
 0x309   :  { %766 = vst.msk [vmem:[%s1404_s5 + $0x28] sm:$0xff] %vm45_vm0, %v750_v3  ;;  %v749_v11 = vsel %vm717_vm7, %v701_v61, %v733_v4  ;;  %v703_v8 = vmul.f32 %v962_v5, %v1262_v32  ;;  %971 = vrsqrt.f32 %v678_v1 }
 0x30a   :  { %765 = vst.msk [vmem:[%s1404_s5 + $0x20] sm:$0xff] %vm45_vm0, %v749_v11  ;;  %vm720_vm8 = vcmp.ge.f32.partialorder %v704_v6, 0.0  ;;  %v736_v12 = vmul.f32 0.22916667, %v704_v6  ;;  %973 = vrsqrt.f32 %v677_v21  ;;  %v664_v22 = vpop.xlane.xlu1 %663 }
 0x30b   :  { %v964_v30 = vpop.eup %963  ;;  %vm719_vm9 = vcmp.ge.f32.partialorder %v703_v8, 0.0  ;;  %v735_v9 = vmul.f32 0.22916667, %v703_v8  ;;  %v680_v13 = vmax.f32 %v664_v22, 1e-24  ;;  %v661_v14 = vpop.xlane.xlu0 %660 }
 0x30c   :  { %v966_v16 = vpop.eup %965  ;;  %v752_v27 = vsel %vm720_vm8, %v704_v6, %v736_v12  ;;  %v706_v17 = vmul.f32 %v964_v30, %v1270_v38  ;;  %v679_v32 = vmax.f32 %v661_v14, 1e-24 }
 0x30d   :  { %768 = vst.msk [vmem:[%s1404_s5 + $0x38] sm:$0xff] %vm45_vm0, %v752_v27  ;;  %v751_v18 = vsel %vm719_vm9, %v703_v8, %v735_v9  ;;  %v705_v19 = vmul.f32 %v966_v16, %v1274_v41  ;;  %975 = vrsqrt.f32 %v680_v13 }
 0x30e   :  { %767 = vst.msk [vmem:[%s1404_s5 + $0x30] sm:$0xff] %vm45_vm0, %v751_v18  ;;  %vm722_vm10 = vcmp.ge.f32.partialorder %v706_v17, 0.0  ;;  %v738_v20 = vmul.f32 0.22916667, %v706_v17  ;;  %977 = vrsqrt.f32 %v679_v32 }
 0x30f   :  { %v968_v24 = vpop.eup %967  ;;  %vm721_vm11 = vcmp.ge.f32.partialorder %v705_v19, 0.0  ;;  %v737_v38 = vmul.f32 0.22916667, %v705_v19 }
 0x310   :  { %v970_v25 = vpop.eup %969  ;;  %v754_v26 = vsel %vm722_vm10, %v706_v17, %v738_v20  ;;  %v708_v29 = vmul.f32 %v968_v24, %v1282_v46 }
 0x311   :  { %770 = vst.msk [vmem:[%s1404_s5 + $0x48] sm:$0xff] %vm45_vm0, %v754_v26  ;;  %v753_v41 = vsel %vm721_vm11, %v705_v19, %v737_v38  ;;  %v707_v31 = vmul.f32 %v970_v25, %v1286_v49 }
 0x312   :  { %769 = vst.msk [vmem:[%s1404_s5 + $0x40] sm:$0xff] %vm45_vm0, %v753_v41  ;;  %vm724_vm12 = vcmp.ge.f32.partialorder %v708_v29, 0.0  ;;  %v740_v33 = vmul.f32 0.22916667, %v708_v29 }
 0x313   :  { %v972_v44 = vpop.eup %971  ;;  %vm723_vm13 = vcmp.ge.f32.partialorder %v707_v31, 0.0  ;;  %v739_v34 = vmul.f32 0.22916667, %v707_v31 }
 0x314   :  { %v974_v36 = vpop.eup %973  ;;  %v756_v46 = vsel %vm724_vm12, %v708_v29, %v740_v33  ;;  %v710_v37 = vmul.f32 %v972_v44, %v1294_v55 }
 0x315   :  { %772 = vst.msk [vmem:[%s1404_s5 + $0x58] sm:$0xff] %vm45_vm0, %v756_v46  ;;  %v755_v49 = vsel %vm723_vm13, %v707_v31, %v739_v34  ;;  %v709_v39 = vmul.f32 %v974_v36, %v1298_v58 }
 0x316   :  { %771 = vst.msk [vmem:[%s1404_s5 + $0x50] sm:$0xff] %vm45_vm0, %v755_v49  ;;  %vm726_vm14 = vcmp.ge.f32.partialorder %v710_v37, 0.0  ;;  %v742_v40 = vmul.f32 0.22916667, %v710_v37 }
 0x317   :  { %v976_v42 = vpop.eup %975  ;;  %vm725_vm15 = vcmp.ge.f32.partialorder %v709_v39, 0.0  ;;  %v741_v43 = vmul.f32 0.22916667, %v709_v39 }
 0x318   :  { %v978_v45 = vpop.eup %977  ;;  %v758_v55 = vsel %vm726_vm14, %v710_v37, %v742_v40  ;;  %v712_v52 = vmul.f32 %v976_v42, %v1306_v57 }
 0x319   :  { %774 = vst.msk [vmem:[%s1404_s5 + $0x68] sm:$0xff] %vm45_vm0, %v758_v55  ;;  %v757_v58 = vsel %vm725_vm15, %v709_v39, %v741_v43  ;;  %v711_v47 = vmul.f32 %v978_v45, %v1310_v0 }
 0x31a   :  { %773 = vst.msk [vmem:[%s1404_s5 + $0x60] sm:$0xff] %vm45_vm0, %v757_v58  ;;  %vm728_vm1 = vcmp.ge.f32.partialorder %v712_v52, 0.0  ;;  %v744_v28 = vmul.f32 0.22916667, %v712_v52 }
 0x31b   :  { %vm727_vm2 = vcmp.ge.f32.partialorder %v711_v47, 0.0  ;;  %v743_v7 = vmul.f32 0.22916667, %v711_v47 }
 0x31c   :  { %v760_v48 = vsel %vm728_vm1, %v712_v52, %v744_v28 }
 0x31d   :  { %776 = vst.msk [vmem:[%s1404_s5 + $0x78] sm:$0xff] %vm45_vm0, %v760_v48  ;;  %v759_v57 = vsel %vm727_vm2, %v711_v47, %v743_v7 }
 0x31e   :  { %775 = vst.msk [vmem:[%s1404_s5 + $0x70] sm:$0xff] %vm45_vm0, %v759_v57 }

</bundles_post_ra>
